<compile_context>
chip_gen: v5e
topology: v5e:2x2
jax: 0.10.0
libtpu: 0.0.40
codegen_flags: <defaults>
</compile_context>

<pallas_src>
import functools

import jax
import jax.numpy as jnp
from jax.experimental import pallas as pl
from jax.experimental.pallas import tpu as pltpu


SEQUENCE_LENGTH = 8
OCTAVES = 3
INCLUDE_CONSTANT = True


def tri(x, offset=0.5):
    return 2.0 * jnp.abs((x - offset) % 2.0 - 1.0) - 1.0


def channel_params(octaves=OCTAVES, include_constant=INCLUDE_CONSTANT):
    """Per-channel (1/div, offset, mask) in the exact PyTorch __init__ ordering."""
    inv_divs, offsets, masks = [], [], []
    for octave in range(octaves):
        div = float(2 ** octave)
        for i, offset in enumerate((0.0, 0.5)):
            if octave == 0 and i == 1:           # octave-0 / offset-0.5 is skipped
                continue
            inv_divs.append(1.0 / div)
            offsets.append(offset)
            masks.append(1.0)
    if include_constant:                          # constant (all-zero) channel last
        inv_divs.append(1.0)
        offsets.append(0.0)
        masks.append(0.0)
    return tuple(inv_divs), tuple(offsets), tuple(masks)


def make_encodings(sequence_length=SEQUENCE_LENGTH, octaves=OCTAVES,
                   include_constant=INCLUDE_CONSTANT):
    """Table identical to the PyTorch buffer (used only by the gather reference)."""
    x = jnp.arange(sequence_length, dtype=jnp.float32)
    encs = []
    for octave in range(octaves):
        div = 2 ** octave
        for i, offset in enumerate((0.0, 0.5)):
            if octave == 0 and i == 1:
                continue
            encs.append(tri(x / div, offset=offset))
    if include_constant:
        encs.append(jnp.zeros((sequence_length,), dtype=jnp.float32))
    return jnp.stack(encs)  # (D1, L) float32


# --------------------------------------------------------------------------- kernel

def _tri_pe_kernel(coords_ref, params_ref, out_ref, *, seq_len, use_and):
    # coords_ref: (bt, st) int32 ; params_ref: (3, d1, 1) f32 ; out_ref: (bt, d1, st) f32
    coords = coords_ref[...]
    if use_and:
        # power-of-two modulus: one VALU op, matches Python/PyTorch % for negatives.
        cm = jnp.bitwise_and(coords, jnp.int32(seq_len - 1))
    else:
        cm = jnp.mod(coords, jnp.int32(seq_len))

    x = cm.astype(jnp.float32)[:, None, :]        # (bt, 1, st)

    inv_div = params_ref[0]                       # (d1, 1) -> broadcasts to (1, d1, 1)
    offset = params_ref[1]
    mask = params_ref[2]

    # Triangle wave, pure VPU:  2*|((x/div - off) mod 2) - 1| - 1
    t = x * inv_div - offset                      # (bt, d1, st)
    m = t - 2.0 * jnp.floor(t * 0.5)              # == t % 2, cheaper than lax.rem
    out_ref[...] = (2.0 * jnp.abs(m - 1.0) - 1.0) * mask


# ----------------------------------------------------------------------- tile picker

def _pick_tiles(B, S, d1, target_block_bytes):
    padded_d = -(-d1 // 8) * 8            # output face pads D1 to 8 sublanes in VMEM
    row_bytes = (padded_d + 1) * 4        # per (b, s) element: padded out + coords

    # Lane (S) tile: full extent if tiny, else a multiple of 128 sized so the block
    # hits the byte budget even when B is small (small-B / large-S inputs).
    if S < 128:
        s_tile = S
    else:
        b_cap = B if B < 8 else 8
        max_s = (target_block_bytes // (row_bytes * b_cap) // 128) * 128
        s_tile = min((S // 128) * 128, max(128, max_s))

    # Batch tile: fill the byte budget.  Must be a multiple of 8 (sublane axis of the
    # coordinates block) or cover B entirely.
    b_tile = max(1, target_block_bytes // (row_bytes * s_tile))
    if b_tile >= B:
        b_tile = B
    else:
        b_tile = max(8, (b_tile // 8) * 8)
        if b_tile >= B:
            b_tile = B

    # v7x has 2 TensorCores sharded over "parallel" grid axes: avoid a single-step
    # grid for non-trivial outputs (harmless on single-core v5e/v6e).
    out_bytes = B * d1 * S * 4
    if b_tile >= B and s_tile >= S and out_bytes > (2 << 20):
        if S >= 256:
            s_tile = max(128, ((s_tile // 2) // 128) * 128)
        elif B > 8:
            half = -(-B // 2)
            half = -(-half // 8) * 8
            if half < B:
                b_tile = half
    return b_tile, s_tile


# -------------------------------------------------------------------------- wrapper

def _tri_pe_jnp(coordinates, sequence_length, inv_divs, offsets, masks):
    """Pure-XLA path for tiny call-sites (fuses into the consumer)."""
    cm = jnp.mod(coordinates, sequence_length).astype(jnp.float32)[:, None, :]
    inv = jnp.asarray(inv_divs, jnp.float32).reshape(1, -1, 1)
    off = jnp.asarray(offsets, jnp.float32).reshape(1, -1, 1)
    msk = jnp.asarray(masks, jnp.float32).reshape(1, -1, 1)
    t = cm * inv - off
    m = t - 2.0 * jnp.floor(t * 0.5)
    return (2.0 * jnp.abs(m - 1.0) - 1.0) * msk


def triangular_positional_encoding_1d(coordinates, *,
                                      sequence_length=SEQUENCE_LENGTH,
                                      octaves=OCTAVES,
                                      include_constant=INCLUDE_CONSTANT,
                                      min_pallas_bytes=1 << 20,
                                      target_block_bytes=4 << 20):
    coordinates = coordinates.astype(jnp.int32)
    B, S = coordinates.shape

    inv_divs, offsets, masks = channel_params(octaves, include_constant)
    d1 = len(inv_divs)
    out_bytes = B * d1 * S * 4

    if out_bytes < min_pallas_bytes:
        # Launch + >=1 grid step of a pallas_call costs more than the data movement
        # at this size; let XLA fuse the analytic wave instead.
        # TODO(synk): ideally this encoding is fused directly into its consumer kernel.
        return _tri_pe_jnp(coordinates, sequence_length, inv_divs, offsets, masks)

    b_tile, s_tile = _pick_tiles(B, S, d1, target_block_bytes)
    grid = (pl.cdiv(B, b_tile), pl.cdiv(S, s_tile))
    is_pow2 = sequence_length > 0 and (sequence_length & (sequence_length - 1)) == 0

    # Per-channel constants passed as a (3, d1, 1) VMEM input (fixes the
    # "kernel captures constants" tracing error).
    params = jnp.stack([
        jnp.asarray(inv_divs, jnp.float32),
        jnp.asarray(offsets, jnp.float32),
        jnp.asarray(masks, jnp.float32),
    ])[..., None]

    kernel = functools.partial(_tri_pe_kernel, seq_len=sequence_length,
                               use_and=is_pow2)

    cost = pl.CostEstimate(
        flops=8 * B * d1 * S,                    # ~8 VPU ops per output element
        transcendentals=0,
        bytes_accessed=B * S * 4 + out_bytes + int(params.size) * 4,
    )

    return pl.pallas_call(
        kernel,
        out_shape=jax.ShapeDtypeStruct((B, d1, S), jnp.float32),
        grid=grid,
        in_specs=[
            pl.BlockSpec((b_tile, s_tile), lambda i, j: (i, j)),
            pl.BlockSpec((3, d1, 1), lambda i, j: (0, 0, 0)),
        ],
        out_specs=pl.BlockSpec((b_tile, d1, s_tile), lambda i, j: (i, 0, j)),
        compiler_params=pltpu.CompilerParams(
            dimension_semantics=("parallel", "parallel"),
            vmem_limit_bytes=32 * 1024 * 1024),
        cost_estimate=cost,
    )(coordinates, params)


# ------------------------------------------------------------------------ reference

def _reference(coordinates, encodings, sequence_length=SEQUENCE_LENGTH):
    cm = jnp.mod(coordinates, sequence_length)             # (B, S)
    gathered = jnp.take(encodings, cm, axis=1)             # (D1, B, S)
    return jnp.transpose(gathered, (1, 0, 2))              # (B, D1, S)


if __name__ == "__main__":
    key = jax.random.PRNGKey(0)
    encodings = make_encodings()                           # (6, 8) float32

    # Small shape matching the module defaults (negative coords exercise the modulus).
    B, S = 2, 8
    coordinates = jax.random.randint(key, (B, S), -5, 23, dtype=jnp.int32)

    # Force the Pallas path even at this tiny size so the kernel itself is exercised.
    out = jax.block_until_ready(
        triangular_positional_encoding_1d(coordinates, min_pallas_bytes=0))
    ref = _reference(coordinates, encodings)
    assert out.shape == (B, encodings.shape[0], S)
    assert out.dtype == jnp.float32
    assert jnp.allclose(out, ref, atol=1e-6), "Pallas result does not match reference"

    # Default (auto) path: tiny call-sites use the fused pure-XLA fallback.
    out_auto = jax.block_until_ready(triangular_positional_encoding_1d(coordinates))
    assert jnp.allclose(out_auto, ref, atol=1e-6), "fast-path result mismatch"

    # Larger, lane-dense case exercising the byte-budgeted, multi-step parallel grid.
    B2, S2 = 64, 2048
    coords2 = jax.random.randint(jax.random.PRNGKey(1), (B2, S2), -17, 10_000,
                                 dtype=jnp.int32)
    out2 = jax.block_until_ready(triangular_positional_encoding_1d(coords2))
    ref2 = _reference(coords2, encodings)
    assert jnp.allclose(out2, ref2, atol=1e-6), "tiled Pallas result mismatch"

    print("KERNEL_OK")
</pallas_src>

<mosaic_0001>
module attributes {stable_mosaic.version = 11 : i64} {
  func.func @_tri_pe_kernel(%arg0: i32, %arg1: i32, %arg2: memref<2x8xi32, #tpu.memory_space<vmem>>, %arg3: memref<3x6x1xf32, #tpu.memory_space<vmem>>, %arg4: memref<2x6x8xf32, #tpu.memory_space<vmem>>) attributes {dimension_semantics = [#tpu.dimension_semantics<parallel>, #tpu.dimension_semantics<parallel>], iteration_bounds = array<i64: 1, 1>, scalar_prefetch = 0 : i64, scratch_operands = 0 : i64, tpu.core_type = #tpu.core_type<tc>, window_params = [{transform_indices = @transform_0, window_bounds = array<i64: 2, 8>}, {pipeline_mode = #tpu.pipeline_mode<synchronous>, transform_indices = @transform_1, window_bounds = array<i64: 3, 6, 1>}, {transform_indices = @transform_2, window_bounds = array<i64: 2, 6, 8>}]} {
    %c0 = arith.constant 0 : index
    %c0_0 = arith.constant 0 : index
    %0 = vector.load %arg2[%c0, %c0_0] : memref<2x8xi32, #tpu.memory_space<vmem>>, vector<2x8xi32>
    %c7_i32 = arith.constant 7 : i32
    %1 = vector.broadcast %c7_i32 : i32 to vector<2x8xi32>
    %2 = arith.andi %0, %1 : vector<2x8xi32>
    %3 = arith.sitofp %2 : vector<2x8xi32> to vector<2x8xf32>
    %4 = vector.shape_cast %3 : vector<2x8xf32> to vector<2x1x8xf32>
    %c0_1 = arith.constant 0 : index
    %c0_2 = arith.constant 0 : index
    %c0_3 = arith.constant 0 : index
    %5 = vector.load %arg3[%c0_1, %c0_2, %c0_3] : memref<3x6x1xf32, #tpu.memory_space<vmem>>, vector<1x6x1xf32>
    %6 = vector.shape_cast %5 : vector<1x6x1xf32> to vector<6x1xf32>
    %c1 = arith.constant 1 : index
    %c0_4 = arith.constant 0 : index
    %c0_5 = arith.constant 0 : index
    %7 = vector.load %arg3[%c1, %c0_4, %c0_5] : memref<3x6x1xf32, #tpu.memory_space<vmem>>, vector<1x6x1xf32>
    %8 = vector.shape_cast %7 : vector<1x6x1xf32> to vector<6x1xf32>
    %c2 = arith.constant 2 : index
    %c0_6 = arith.constant 0 : index
    %c0_7 = arith.constant 0 : index
    %9 = vector.load %arg3[%c2, %c0_6, %c0_7] : memref<3x6x1xf32, #tpu.memory_space<vmem>>, vector<1x6x1xf32>
    %10 = vector.shape_cast %9 : vector<1x6x1xf32> to vector<6x1xf32>
    %11 = vector.shape_cast %6 : vector<6x1xf32> to vector<1x6x1xf32>
    %12 = vector.broadcast %4 : vector<2x1x8xf32> to vector<2x6x8xf32>
    %13 = vector.broadcast %11 : vector<1x6x1xf32> to vector<2x6x8xf32>
    %14 = arith.mulf %12, %13 : vector<2x6x8xf32>
    %15 = vector.shape_cast %8 : vector<6x1xf32> to vector<1x6x1xf32>
    %16 = vector.broadcast %15 : vector<1x6x1xf32> to vector<2x6x8xf32>
    %17 = arith.subf %14, %16 : vector<2x6x8xf32>
    %cst = arith.constant 5.000000e-01 : f32
    %18 = vector.broadcast %cst : f32 to vector<2x6x8xf32>
    %19 = arith.mulf %17, %18 : vector<2x6x8xf32>
    %20 = math.floor %19 : vector<2x6x8xf32>
    %cst_8 = arith.constant 2.000000e+00 : f32
    %21 = vector.broadcast %cst_8 : f32 to vector<2x6x8xf32>
    %22 = arith.mulf %21, %20 : vector<2x6x8xf32>
    %23 = arith.subf %17, %22 : vector<2x6x8xf32>
    %cst_9 = arith.constant 1.000000e+00 : f32
    %24 = vector.broadcast %cst_9 : f32 to vector<2x6x8xf32>
    %25 = arith.subf %23, %24 : vector<2x6x8xf32>
    %26 = math.absf %25 : vector<2x6x8xf32>
    %cst_10 = arith.constant 2.000000e+00 : f32
    %27 = vector.broadcast %cst_10 : f32 to vector<2x6x8xf32>
    %28 = arith.mulf %27, %26 : vector<2x6x8xf32>
    %cst_11 = arith.constant 1.000000e+00 : f32
    %29 = vector.broadcast %cst_11 : f32 to vector<2x6x8xf32>
    %30 = arith.subf %28, %29 : vector<2x6x8xf32>
    %31 = vector.shape_cast %10 : vector<6x1xf32> to vector<1x6x1xf32>
    %32 = vector.broadcast %31 : vector<1x6x1xf32> to vector<2x6x8xf32>
    %33 = arith.mulf %30, %32 : vector<2x6x8xf32>
    %c0_12 = arith.constant 0 : index
    %c0_13 = arith.constant 0 : index
    %c0_14 = arith.constant 0 : index
    %34 = vector.load %arg4[%c0_12, %c0_13, %c0_14] : memref<2x6x8xf32, #tpu.memory_space<vmem>>, vector<2x6x8xf32>
    tpu.vector_store %arg4[%c0_12, %c0_13, %c0_14], %33 {strides = array<i32>} : memref<2x6x8xf32, #tpu.memory_space<vmem>>, vector<2x6x8xf32>,
    return
  }
  func.func @transform_0(%arg0: i32, %arg1: i32) -> (i32, i32) {
    %c0_i32 = arith.constant 0 : i32
    return %arg0, %arg1 : i32, i32
  }
  func.func @transform_1(%arg0: i32, %arg1: i32) -> (i32, i32, i32) {
    %c0_i32 = arith.constant 0 : i32
    %c0_i32_0 = arith.constant 0 : i32
    %c0_i32_1 = arith.constant 0 : i32
    %c0_i32_2 = arith.constant 0 : i32
    return %c0_i32, %c0_i32_0, %c0_i32_1 : i32, i32, i32
  }
  func.func @transform_2(%arg0: i32, %arg1: i32) -> (i32, i32, i32) {
    %c0_i32 = arith.constant 0 : i32
    %c0_i32_0 = arith.constant 0 : i32
    return %arg0, %c0_i32, %arg1 : i32, i32, i32
  }
}

</mosaic_0001>

<bundles_post_ra>
// kernel: tpu_custom_call.1
= control target key start
LH: loop header
LB: loop body
LE: loop exit
PB: predicated region body
PF: predicated region fallthrough
CT: control target
= control target key end

     0   :  { %v78_v0 = vmov 0   ;;  %vm62_vm0 = vcmask 62464   ;;  %s112_s1 = inlined_call_operand.vmem [shape: f32[3,6,1], index: 1, kind: input, shape index: {}]   ;;  %s113_s0 = inlined_call_operand.vmem [shape: s32[2,8], index: 0, kind: input, shape index: {}]   ;;  %s114_s2 = inlined_call_operand.vmem [shape: f32[2,6,8], index: 2, kind: output, shape index: {}]  }
   0x1   :  { %76 = vset.pattern.permute.xlu0 %v78_v0  ;;  %v16_v1 = vld [vmem:[%s112_s1] sm:$0x3f]  ;;  %77 = vset.pattern.permute.xlu1 %v78_v0  ;;  %v70_v2 = vld [vmem:[%s112_s1 + $0x10] sm:$0x3f]  ;;  %v69_v3 = vld [vmem:[%s112_s1 + $0x8] sm:$0x3f] }
   0x2   :  { %27 = vperm.xlu0 %76, %v16_v1   ;;  %57 = vperm.xlu1 %77, %v70_v2   ;;  %v11_v4 = vld [vmem:[%s113_s0] sm:$0x3] }
   0x3   :  { %v12_v5 = vand.u32 7, %v11_v4 }
   0x5   :  { %v13_v6 = vcvt.s32.f32 %v12_v5 }
   0x7   :  { %v15_v7 = vrot.slane %v13_v6, 1  ;;  %v21_v9 = vperm.slane %v13_v6, 0 }
   0x9   :  { %v22_v10 = vperm.slane %v15_v7, 0 }
   0xa   :  { %34 = vperm.xlu0 %76, %v69_v3  }
  0x74   :  { %v28_v8 = vpop.permute.xlu0 %27  ;;  %v58_v30 = vpop.permute.xlu1 %57 }
  0x75   :  { %v30_v11 = vmul.f32 %v28_v8, %v21_v9  ;;  %v31_v12 = vmul.f32 %v28_v8, %v22_v10 }
  0x7c   :  { %v35_v13 = vpop.permute.xlu0 %34 }
  0x7d   :  { %v37_v14 = vsub.f32 %v30_v11, %v35_v13  ;;  %v38_v15 = vsub.f32 %v31_v12, %v35_v13 }
  0x7f   :  { %v39_v16 = vmul.f32 0.5, %v37_v14  ;;  %v40_v17 = vmul.f32 0.5, %v38_v15 }
  0x81   :  { %v41_v18 = vfloor.f32 %v39_v16  ;;  %v42_v19 = vfloor.f32 %v40_v17 }
  0x83   :  { %v43_v20 = vmul.f32 2.0, %v41_v18  ;;  %v44_v21 = vmul.f32 2.0, %v42_v19 }
  0x85   :  { %v45_v22 = vsub.f32 %v37_v14, %v43_v20  ;;  %v46_v23 = vsub.f32 %v38_v15, %v44_v21 }
  0x87   :  { %v71_v24 = vadd.f32 -1.0, %v45_v22  ;;  %v72_v25 = vadd.f32 -1.0, %v46_v23 }
  0x89   :  { %v49_v26 = vand.u32 2147483647, %v71_v24  ;;  %v50_v27 = vand.u32 2147483647, %v72_v25 }
  0x8b   :  { %v51_v28 = vmul.f32 2.0, %v49_v26  ;;  %v52_v29 = vmul.f32 2.0, %v50_v27 }
  0x8d   :  { %v73_v31 = vadd.f32 -1.0, %v51_v28  ;;  %v74_v32 = vadd.f32 -1.0, %v52_v29 }
  0x8f   :  { %v60_v33 = vmul.f32 %v73_v31, %v58_v30  ;;  %v61_v34 = vmul.f32 %v74_v32, %v58_v30 }
  0x91   :  { %63 = vst.msk [vmem:[%s114_s2] sm:$0x3f] %vm62_vm0, %v60_v33 }
  0x92   :  { %64 = vst.msk [vmem:[%s114_s2 + $0x8] sm:$0x3f] %vm62_vm0, %v61_v34 }

</bundles_post_ra>
